<compile_context>
chip_gen: v7x
topology: tpu7x:2x2x1
jax: 0.10.0
libtpu: 0.0.40
codegen_flags: <defaults>
</compile_context>

<pallas_src>
import functools

import jax
import jax.numpy as jnp
from jax.experimental import pallas as pl
from jax.experimental.pallas import tpu as pltpu

HIDDEN = 256
LANE = 128


def _round_up(x, m):
    return (x + m - 1) // m * m


def actor_kernel(x_ref, w1_ref, b1_ref, w2_ref, b2_ref, wh_ref, bh_ref,
                 out_ref, *, max_action, num_mu):
    # ---- layer 1: (tb, K) @ (K, 256), bf16 MXU inputs, f32 accumulation ----
    h1 = jnp.dot(x_ref[...], w1_ref[...],
                 preferred_element_type=jnp.float32) + b1_ref[...]
    h1 = jnp.maximum(h1, 0.0).astype(w2_ref.dtype)

    # ---- layer 2: (tb, 256) @ (256, 256) ----
    h2 = jnp.dot(h1, w2_ref[...],
                 preferred_element_type=jnp.float32) + b2_ref[...]
    h2 = jnp.maximum(h2, 0.0).astype(wh_ref.dtype)

    # ---- fused mu|std head: (tb, 256) @ (256, h_pad) ----
    head = jnp.dot(h2, wh_ref[...],
                   preferred_element_type=jnp.float32) + bh_ref[...]
    # Only the first 2*num_mu columns are real; drop the lane padding BEFORE
    # the transcendentals so tanh/softplus only run on useful lanes.
    head = head[:, :2 * num_mu]

    # columns [0, num_mu)        -> tanh(.) * max_action   (mu)
    # columns [num_mu, 2*num_mu) -> softplus(.)            (std, stable form)
    col = jax.lax.broadcasted_iota(jnp.int32, head.shape, 1)
    mu = jnp.tanh(head) * max_action
    std = jnp.maximum(head, 0.0) + jnp.log1p(jnp.exp(-jnp.abs(head)))
    out_ref[...] = jnp.where(col < num_mu, mu, std).astype(out_ref.dtype)


def pack_params(params, compute_dtype=jnp.bfloat16):
    """One-time packing/casting of Actor weights for the Pallas kernel.

    Call this once (e.g. after (re-)loading parameters), NOT per forward.
    Weights go to bf16 for the MXU; biases stay f32 (added to f32 accum).
    The mu/std heads are packed into one lane-dense (256, h_pad) weight.
    """
    A = params["wmu"].shape[1]
    h_pad = max(LANE, _round_up(2 * A, LANE))

    wh = jnp.zeros((HIDDEN, h_pad), compute_dtype)
    wh = wh.at[:, :A].set(params["wmu"].astype(compute_dtype))
    wh = wh.at[:, A:2 * A].set(params["wstd"].astype(compute_dtype))

    bh = jnp.zeros((1, h_pad), jnp.float32)
    bh = bh.at[:, :A].set(params["bmu"].reshape(1, A).astype(jnp.float32))
    bh = bh.at[:, A:2 * A].set(params["bstd"].reshape(1, A).astype(jnp.float32))

    return {
        "w1": params["w1"].astype(compute_dtype),
        "b1": params["b1"].reshape(1, HIDDEN).astype(jnp.float32),
        "w2": params["w2"].astype(compute_dtype),
        "b2": params["b2"].reshape(1, HIDDEN).astype(jnp.float32),
        "wh": wh,
        "bh": bh,
        "action_dim": A,
    }


def actor_forward(state, packed, max_action):
    """Forward pass.  `packed` must come from pack_params (hoisted packing)."""
    B, state_dim = state.shape
    A = packed["action_dim"]
    h_pad = packed["wh"].shape[1]
    compute_dtype = packed["w1"].dtype

    # Batch tile: multiple of 16 (bf16 packs 2 rows/sublane), aim for >= 2
    # grid steps so the "parallel" axis shards across v7x's two TensorCores,
    # cap at 1024 rows (fewer grid steps / bigger DMA tiles on v6e/v7x while
    # staying tiny vs. VMEM limits).
    n_steps = max(2, -(-B // 1024))
    tb = min(1024, _round_up(-(-B // n_steps), 16))
    b_pad = _round_up(B, tb)
    grid = (b_pad // tb,)

    # Only per-call data movement: cast state to bf16 (+ batch pad if needed).
    x = state.astype(compute_dtype)
    if b_pad != B:
        x = jnp.pad(x, ((0, b_pad - B), (0, 0)))

    kernel = functools.partial(actor_kernel,
                               max_action=float(max_action), num_mu=A)
    const = lambda shape: pl.BlockSpec(shape, lambda i: (0, 0))

    weight_bytes = sum(int(a.size) * a.dtype.itemsize
                       for k, a in packed.items() if k != "action_dim")
    cost = pl.CostEstimate(
        flops=2 * b_pad * (state_dim * HIDDEN + HIDDEN * HIDDEN + HIDDEN * h_pad),
        transcendentals=3 * b_pad * 2 * A,
        bytes_accessed=int(x.size) * x.dtype.itemsize
                       + b_pad * 2 * A * 4 + weight_bytes,
    )

    fused = pl.pallas_call(
        kernel,
        out_shape=jax.ShapeDtypeStruct((b_pad, 2 * A), jnp.float32),
        grid=grid,
        in_specs=[
            pl.BlockSpec((tb, state_dim), lambda i: (i, 0)),  # pipelined state tile
            const(packed["w1"].shape), const(packed["b1"].shape),
            const(packed["w2"].shape), const(packed["b2"].shape),
            const(packed["wh"].shape), const(packed["bh"].shape),
        ],
        out_specs=pl.BlockSpec((tb, 2 * A), lambda i: (i, 0)),
        compiler_params=pltpu.CompilerParams(
            dimension_semantics=("parallel",)),
        cost_estimate=cost,
    )(x, packed["w1"], packed["b1"], packed["w2"], packed["b2"],
      packed["wh"], packed["bh"])

    mu = fused[:B, :A]
    std = fused[:B, A:]
    return mu, std


def init_params(key, state_dim, action_dim):
    """Mirror the module's __init__: weights ~ N(0, 0.1); biases use the
    PyTorch Linear default U(-1/sqrt(fan_in), 1/sqrt(fan_in)).
    Weights stored as (in_features, out_features)."""
    ks = jax.random.split(key, 8)

    def w(k, fan_in, fan_out):
        return (0.1 * jax.random.normal(k, (fan_in, fan_out))).astype(jnp.float32)

    def b(k, fan_in, fan_out):
        bound = 1.0 / jnp.sqrt(fan_in)
        return jax.random.uniform(
            k, (1, fan_out), minval=-bound, maxval=bound
        ).astype(jnp.float32)

    return {
        "w1": w(ks[0], state_dim, HIDDEN),    "b1": b(ks[1], state_dim, HIDDEN),
        "w2": w(ks[2], HIDDEN, HIDDEN),       "b2": b(ks[3], HIDDEN, HIDDEN),
        "wmu": w(ks[4], HIDDEN, action_dim),  "bmu": b(ks[5], HIDDEN, action_dim),
        "wstd": w(ks[6], HIDDEN, action_dim), "bstd": b(ks[7], HIDDEN, action_dim),
    }


def actor_ref(state, params, max_action):
    """Pure-JAX f32 reference for correctness checking."""
    h1 = jax.nn.relu(state @ params["w1"] + params["b1"])
    h2 = jax.nn.relu(h1 @ params["w2"] + params["b2"])
    mu = jnp.tanh(h2 @ params["wmu"] + params["bmu"]) * max_action
    std = jax.nn.softplus(h2 @ params["wstd"] + params["bstd"])
    return mu, std


if __name__ == "__main__":
    key = jax.random.PRNGKey(0)
    k_state, k_params = jax.random.split(key)

    batch = 2
    state_dim = 16
    action_dim = 4
    max_action = 2.0

    state = jax.random.normal(k_state, (batch, state_dim), dtype=jnp.float32)
    params = init_params(k_params, state_dim, action_dim)

    packed = pack_params(params)                 # one-time packing (hoisted)
    mu, std = actor_forward(state, packed, max_action)
    jax.block_until_ready((mu, std))

    mu_ref, std_ref = actor_ref(state, params, max_action)
    assert mu.shape == (batch, action_dim) and std.shape == (batch, action_dim)
    # bf16 MXU inputs with f32 accumulation -> loosened tolerance vs f32 ref.
    assert jnp.allclose(mu, mu_ref, atol=5e-2, rtol=5e-2)
    assert jnp.allclose(std, std_ref, atol=5e-2, rtol=5e-2)
    assert bool(jnp.all(std > 0))

    print("KERNEL_OK")
</pallas_src>

<mosaic_0001>
module attributes {stable_mosaic.version = 11 : i64} {
  func.func @actor_kernel(%arg0: i32, %arg1: memref<16x16xbf16, #tpu.memory_space<vmem>>, %arg2: memref<16x256xbf16, #tpu.memory_space<vmem>>, %arg3: memref<1x256xf32, #tpu.memory_space<vmem>>, %arg4: memref<256x256xbf16, #tpu.memory_space<vmem>>, %arg5: memref<1x256xf32, #tpu.memory_space<vmem>>, %arg6: memref<256x128xbf16, #tpu.memory_space<vmem>>, %arg7: memref<1x128xf32, #tpu.memory_space<vmem>>, %arg8: memref<16x8xf32, #tpu.memory_space<vmem>>) attributes {dimension_semantics = [#tpu.dimension_semantics<parallel>], iteration_bounds = array<i64: 1>, scalar_prefetch = 0 : i64, scratch_operands = 0 : i64, tpu.core_type = #tpu.core_type<tc>, window_params = [{transform_indices = @transform_0, window_bounds = array<i64: 16, 16>}, {pipeline_mode = #tpu.pipeline_mode<synchronous>, transform_indices = @transform_1, window_bounds = array<i64: 16, 256>}, {pipeline_mode = #tpu.pipeline_mode<synchronous>, transform_indices = @transform_2, window_bounds = array<i64: 1, 256>}, {pipeline_mode = #tpu.pipeline_mode<synchronous>, transform_indices = @transform_3, window_bounds = array<i64: 256, 256>}, {pipeline_mode = #tpu.pipeline_mode<synchronous>, transform_indices = @transform_4, window_bounds = array<i64: 1, 256>}, {pipeline_mode = #tpu.pipeline_mode<synchronous>, transform_indices = @transform_5, window_bounds = array<i64: 256, 128>}, {pipeline_mode = #tpu.pipeline_mode<synchronous>, transform_indices = @transform_6, window_bounds = array<i64: 1, 128>}, {transform_indices = @transform_7, window_bounds = array<i64: 16, 8>}]} {
    %c0 = arith.constant 0 : index
    %c0_0 = arith.constant 0 : index
    %0 = vector.load %arg1[%c0, %c0_0] : memref<16x16xbf16, #tpu.memory_space<vmem>>, vector<16x16xbf16>
    %c0_1 = arith.constant 0 : index
    %c0_2 = arith.constant 0 : index
    %1 = vector.load %arg2[%c0_1, %c0_2] : memref<16x256xbf16, #tpu.memory_space<vmem>>, vector<16x256xbf16>
    %cst = arith.constant dense<0.000000e+00> : vector<16x256xf32>
    %2 = tpu.matmul %0, %1, %cst {dimension_numbers = #tpu.dot_dimension_numbers<[1], [0], [0], [1], [0, 0, 1, 1], [], []>} : vector<16x16xbf16>, vector<16x256xbf16>, vector<16x256xf32> -> vector<16x256xf32>
    %c0_3 = arith.constant 0 : index
    %c0_4 = arith.constant 0 : index
    %3 = vector.load %arg3[%c0_3, %c0_4] : memref<1x256xf32, #tpu.memory_space<vmem>>, vector<1x256xf32>
    %4 = vector.broadcast %3 : vector<1x256xf32> to vector<16x256xf32>
    %5 = arith.addf %2, %4 : vector<16x256xf32>
    %cst_5 = arith.constant 0.000000e+00 : f32
    %6 = vector.broadcast %cst_5 : f32 to vector<16x256xf32>
    %7 = arith.maximumf %5, %6 : vector<16x256xf32>
    %8 = arith.truncf %7 : vector<16x256xf32> to vector<16x256xbf16>
    %c0_6 = arith.constant 0 : index
    %c0_7 = arith.constant 0 : index
    %9 = vector.load %arg4[%c0_6, %c0_7] : memref<256x256xbf16, #tpu.memory_space<vmem>>, vector<256x256xbf16>
    %cst_8 = arith.constant dense<0.000000e+00> : vector<16x256xf32>
    %10 = tpu.matmul %8, %9, %cst_8 {dimension_numbers = #tpu.dot_dimension_numbers<[1], [0], [0], [1], [0, 0, 1, 1], [], []>} : vector<16x256xbf16>, vector<256x256xbf16>, vector<16x256xf32> -> vector<16x256xf32>
    %c0_9 = arith.constant 0 : index
    %c0_10 = arith.constant 0 : index
    %11 = vector.load %arg5[%c0_9, %c0_10] : memref<1x256xf32, #tpu.memory_space<vmem>>, vector<1x256xf32>
    %12 = vector.broadcast %11 : vector<1x256xf32> to vector<16x256xf32>
    %13 = arith.addf %10, %12 : vector<16x256xf32>
    %cst_11 = arith.constant 0.000000e+00 : f32
    %14 = vector.broadcast %cst_11 : f32 to vector<16x256xf32>
    %15 = arith.maximumf %13, %14 : vector<16x256xf32>
    %16 = arith.truncf %15 : vector<16x256xf32> to vector<16x256xbf16>
    %c0_12 = arith.constant 0 : index
    %c0_13 = arith.constant 0 : index
    %17 = vector.load %arg6[%c0_12, %c0_13] : memref<256x128xbf16, #tpu.memory_space<vmem>>, vector<256x128xbf16>
    %cst_14 = arith.constant dense<0.000000e+00> : vector<16x128xf32>
    %18 = tpu.matmul %16, %17, %cst_14 {dimension_numbers = #tpu.dot_dimension_numbers<[1], [0], [0], [1], [0, 0, 1, 1], [], []>} : vector<16x256xbf16>, vector<256x128xbf16>, vector<16x128xf32> -> vector<16x128xf32>
    %c0_15 = arith.constant 0 : index
    %c0_16 = arith.constant 0 : index
    %19 = vector.load %arg7[%c0_15, %c0_16] : memref<1x128xf32, #tpu.memory_space<vmem>>, vector<1x128xf32>
    %20 = vector.broadcast %19 : vector<1x128xf32> to vector<16x128xf32>
    %21 = arith.addf %18, %20 : vector<16x128xf32>
    %22 = vector.extract_strided_slice %21 {offsets = [0, 0], sizes = [16, 8], strides = [1, 1]} : vector<16x128xf32> to vector<16x8xf32>
    %23 = tpu.iota {dimensions = array<i32: 1>} : vector<16x8xi32>
    %24 = math.tanh %22 : vector<16x8xf32>
    %cst_17 = arith.constant 2.000000e+00 : f32
    %25 = vector.broadcast %cst_17 : f32 to vector<16x8xf32>
    %26 = arith.mulf %24, %25 : vector<16x8xf32>
    %cst_18 = arith.constant 0.000000e+00 : f32
    %27 = vector.broadcast %cst_18 : f32 to vector<16x8xf32>
    %28 = arith.maximumf %22, %27 : vector<16x8xf32>
    %29 = math.absf %22 : vector<16x8xf32>
    %cst_19 = arith.constant 0.000000e+00 : f32
    %30 = vector.broadcast %cst_19 : f32 to vector<16x8xf32>
    %31 = arith.subf %30, %29 : vector<16x8xf32>
    %32 = math.exp %31 : vector<16x8xf32>
    %33 = math.log1p %32 : vector<16x8xf32>
    %34 = arith.addf %28, %33 : vector<16x8xf32>
    %c4_i32 = arith.constant 4 : i32
    %35 = vector.broadcast %c4_i32 : i32 to vector<16x8xi32>
    %36 = arith.cmpi slt, %23, %35 : vector<16x8xi32>
    %37 = arith.select %36, %26, %34 : vector<16x8xi1>, vector<16x8xf32>
    %c0_20 = arith.constant 0 : index
    %c0_21 = arith.constant 0 : index
    %38 = vector.load %arg8[%c0_20, %c0_21] : memref<16x8xf32, #tpu.memory_space<vmem>>, vector<16x8xf32>
    tpu.vector_store %arg8[%c0_20, %c0_21], %37 {strides = array<i32>} : memref<16x8xf32, #tpu.memory_space<vmem>>, vector<16x8xf32>,
    return
  }
  func.func @transform_0(%arg0: i32) -> (i32, i32) {
    %c0_i32 = arith.constant 0 : i32
    %c0_i32_0 = arith.constant 0 : i32
    return %arg0, %c0_i32 : i32, i32
  }
  func.func @transform_1(%arg0: i32) -> (i32, i32) {
    %c0_i32 = arith.constant 0 : i32
    %c0_i32_0 = arith.constant 0 : i32
    %c0_i32_1 = arith.constant 0 : i32
    return %c0_i32, %c0_i32_0 : i32, i32
  }
  func.func @transform_2(%arg0: i32) -> (i32, i32) {
    %c0_i32 = arith.constant 0 : i32
    %c0_i32_0 = arith.constant 0 : i32
    %c0_i32_1 = arith.constant 0 : i32
    return %c0_i32, %c0_i32_0 : i32, i32
  }
  func.func @transform_3(%arg0: i32) -> (i32, i32) {
    %c0_i32 = arith.constant 0 : i32
    %c0_i32_0 = arith.constant 0 : i32
    %c0_i32_1 = arith.constant 0 : i32
    return %c0_i32, %c0_i32_0 : i32, i32
  }
  func.func @transform_4(%arg0: i32) -> (i32, i32) {
    %c0_i32 = arith.constant 0 : i32
    %c0_i32_0 = arith.constant 0 : i32
    %c0_i32_1 = arith.constant 0 : i32
    return %c0_i32, %c0_i32_0 : i32, i32
  }
  func.func @transform_5(%arg0: i32) -> (i32, i32) {
    %c0_i32 = arith.constant 0 : i32
    %c0_i32_0 = arith.constant 0 : i32
    %c0_i32_1 = arith.constant 0 : i32
    return %c0_i32, %c0_i32_0 : i32, i32
  }
  func.func @transform_6(%arg0: i32) -> (i32, i32) {
    %c0_i32 = arith.constant 0 : i32
    %c0_i32_0 = arith.constant 0 : i32
    %c0_i32_1 = arith.constant 0 : i32
    return %c0_i32, %c0_i32_0 : i32, i32
  }
  func.func @transform_7(%arg0: i32) -> (i32, i32) {
    %c0_i32 = arith.constant 0 : i32
    %c0_i32_0 = arith.constant 0 : i32
    return %arg0, %c0_i32 : i32, i32
  }
}

</mosaic_0001>

<bundles_post_ra>
// kernel: tpu_custom_call.1
= control target key start
LH: loop header
LB: loop body
LE: loop exit
PB: predicated region body
PF: predicated region fallthrough
CT: control target
= control target key end

     0   :  { %12 = vsyncpa [#allocation3], 0  ;;  %s1037_s0 = inlined_call_operand.hbm [shape: bf16[16,16], index: 0, kind: input, shape index: {}]   ;;  %s1038_s1 = inlined_call_operand.hbm [shape: bf16[16,256], index: 1, kind: input, shape index: {}]   ;;  %s1039_s2 = inlined_call_operand.vmem [shape: f32[1,256], index: 2, kind: input, shape index: {}]   ;;  %s1040_s3 = inlined_call_operand.hbm [shape: bf16[256,256], index: 3, kind: input, shape index: {}]   ;;  %s1041_s4 = inlined_call_operand.vmem [shape: f32[1,256], index: 4, kind: input, shape index: {}]   ;;  %s1042_s5 = inlined_call_operand.hbm [shape: bf16[256,128], index: 5, kind: input, shape index: {}]   ;;  %s1043_s6 = inlined_call_operand.vmem [shape: f32[1,128], index: 6, kind: input, shape index: {}]   ;;  %s1044_s7 = inlined_call_operand.vmem [shape: f32[16,8], index: 7, kind: output, shape index: {}]  }
   0x1   :  { %13 = vsyncpa [#allocation5], 0 }
   0x2   :  { %14 = vsyncpa [#allocation8], 0  ;;  %s902_s24 = smov [#allocation4]   ;;  %s808_s28 = scalar_lea.hbm %s1038_s1, 256 }
   0x3   :  { %s32_s25 = sshll.u32 %s902_s24, 4  ;;  %p809_p0 = scmp.ne.s32.totalorder %s1038_s1, %s808_s28  ;;  %s33_s25 = int_to_ptr.vmem [resolvable:$true] %s32_s25 }
   0x4   :  { %p812_p1 = scmp.lt.u32.totalorder %s808_s28, %s1038_s1 }
   0x6   :  { %p814_p2 = pnand %p812_p1, %p809_p0 }
   0x8   :  { %817 = shalt.err (!%p814_p2)
}
   0x9   :  { %s818_s10 = scalar_lea.vmem %s33_s25, 256  ;;  %p823_p4 = scmp.lt.s32.totalorder %s33_s25, %s33_s25 }
   0xa   :  { %p819_p3 = scmp.ne.s32.totalorder %s33_s25, %s818_s10  ;;  %p824_p5 = scmp.lt.s32.totalorder %s818_s10, %s818_s10 }
   0xc   :  { %p825_p6 = por %p824_p5, %p823_p4 }
   0xe   :  { %p826_p7 = pnand %p825_p6, %p819_p3 }
  0x10   :  { %829 = shalt.err (!%p826_p7)
}
  0x11   :  { %s903_s11 = smov 128   ;;  %s904_s12 = smov 8  }
  0x12   :  { %38 = dma.hbm_to_vmem [thread:$0]  %s1038_s1, 256, %s33_s25, [#allocation5], %s903_s11, %s903_s11, %s904_s12  }
  0x13   :  { %s905_s15 = smov [#allocation2]   ;;  %s830_s19 = scalar_lea.hbm %s1037_s0, 128 }
  0x14   :  { %s20_s16 = sshll.u32 %s905_s15, 4  ;;  %p831_p8 = scmp.ne.s32.totalorder %s1037_s0, %s830_s19  ;;  %s21_s16 = int_to_ptr.vmem [resolvable:$true] %s20_s16 }
  0x15   :  { %p834_p9 = scmp.lt.u32.totalorder %s830_s19, %s1037_s0 }
  0x17   :  { %p836_p10 = pnand %p834_p9, %p831_p8 }
  0x19   :  { %839 = shalt.err (!%p836_p10)
}
  0x1a   :  { %s840_s24 = scalar_lea.vmem %s21_s16, 128  ;;  %p845_p12 = scmp.lt.s32.totalorder %s21_s16, %s21_s16 }
  0x1b   :  { %p841_p11 = scmp.ne.s32.totalorder %s21_s16, %s840_s24  ;;  %p846_p13 = scmp.lt.s32.totalorder %s840_s24, %s840_s24 }
  0x1d   :  { %p847_p0 = por %p846_p13, %p845_p12 }
  0x1f   :  { %p848_p1 = pnand %p847_p0, %p841_p11 }
  0x21   :  { %851 = shalt.err (!%p848_p1)
}
  0x22   :  { %s906_s1 = smov 64   ;;  %s907_s25 = smov 4  }
  0x23   :  { %26 = dma.hbm_to_vmem [thread:$0]  %s1037_s0, 128, %s21_s16, [#allocation3], %s906_s1, %s906_s1, %s907_s25  }
  0x24   :  { %s908_s28 = smov [#allocation6]   ;;  %s909_s30 = smov [#allocation7]  }
  0x25   :  { %s46_s29 = sshll.u32 %s908_s28, 4  ;;  %s60_s8 = sshll.u32 %s909_s30, 4  ;;  %s47_s29 = int_to_ptr.vmem [resolvable:$true] %s46_s29  ;;  %s981_s8 = int_to_ptr.vmem [resolvable:$true] %s60_s8 }
  0x26   :  { %s852_s13 = scalar_lea.hbm %s1040_s3, 4096 }
  0x27   :  { %p853_p2 = scmp.ne.s32.totalorder %s1040_s3, %s852_s13  ;;  %p856_p3 = scmp.lt.u32.totalorder %s852_s13, %s1040_s3 }
  0x29   :  { %p858_p4 = pnand %p856_p3, %p853_p2 }
  0x2b   :  { %861 = shalt.err (!%p858_p4)
}
  0x2c   :  { %s862_s0 = scalar_lea.vmem %s47_s29, 4096  ;;  %p867_p6 = scmp.lt.s32.totalorder %s47_s29, %s47_s29 }
  0x2d   :  { %p863_p5 = scmp.ne.s32.totalorder %s47_s29, %s862_s0  ;;  %p868_p7 = scmp.lt.s32.totalorder %s862_s0, %s862_s0 }
  0x2f   :  { %p869_p8 = por %p868_p7, %p867_p6 }
  0x31   :  { %p870_p9 = pnand %p869_p8, %p863_p5 }
  0x33   :  { %873 = shalt.err (!%p870_p9)
}
  0x34   :  { %52 = dma.hbm_to_vmem [thread:$0]  %s1040_s3, 4096, %s47_s29, [#allocation5], %s903_s11, %s903_s11, %s904_s12  }
  0x35   :  { %s874_s22 = scalar_lea.hbm %s1042_s5, 2048 }
  0x36   :  { %p875_p10 = scmp.ne.s32.totalorder %s1042_s5, %s874_s22  ;;  %p878_p11 = scmp.lt.u32.totalorder %s874_s22, %s1042_s5 }
  0x38   :  { %p880_p12 = pnand %p878_p11, %p875_p10 }
  0x3a   :  { %883 = shalt.err (!%p880_p12)
}
  0x3b   :  { %s884_s28 = scalar_lea.vmem %s981_s8, 2048  ;;  %p889_p0 = scmp.lt.s32.totalorder %s981_s8, %s981_s8 }
  0x3c   :  { %p885_p13 = scmp.ne.s32.totalorder %s981_s8, %s884_s28  ;;  %p890_p1 = scmp.lt.s32.totalorder %s884_s28, %s884_s28 }
  0x3e   :  { %p891_p2 = por %p890_p1, %p889_p0 }
  0x40   :  { %p892_p3 = pnand %p891_p2, %p885_p13 }
  0x42   :  { %895 = shalt.err (!%p892_p3)
}
  0x43   :  { %66 = dma.hbm_to_vmem [thread:$0]  %s1042_s5, 2048, %s981_s8, [#allocation8], %s906_s1, %s906_s1, %s907_s25  }
  0x44   :  { %896 = dma.done.wait [#allocation3], 128  }
  0x45   :  { %897 = vsyncadd [#allocation3], 4294967168 }
  0x46   :  { %898 = dma.done.wait [#allocation5], 4352  }
  0x47   :  { %899 = vsyncadd [#allocation5], 4294962944 }
  0x48   :  { %900 = dma.done.wait [#allocation8], 2048  }
  0x49   :  { %901 = vsyncadd [#allocation8], 4294965248  ;;  %v910_v0 = vmov 0   ;;  %v728_v1 = vld [vmem:[#allocation4 + $0x4] ss:$8 sps:$4 sm:$0xff]   ;;  %v731_v3 = vld [vmem:[#allocation2] sm:$0xff]   ;;  %v88_v47 = vlaneseq }
  0x4a   :  { %149 = vmatprep.mubr.bf16.mxu0 %v910_v0  ;;  %v730_v2 = vld [vmem:[#allocation4] ss:$8 sps:$4 sm:$0xff]   ;;  %117 = vmatprep.subr.bf16.mxu0 %v728_v1  ;;  %vm113_vm0 = vcmask 130048   ;;  %v732_v4 = vld [vmem:[#allocation6 + $0x4] ss:$8 sps:$4 sm:$0xff]   ;;  %vm634_vm3 = vcmask 64512  }
  0x4b   :  { %118 = vmatpush1.bf16.msra.mxu0 %v730_v2  ;;  %v734_v5 = vld [vmem:[#allocation6] ss:$8 sps:$4 sm:$0xff]   ;;  %v735_v6 = vld [vmem:[#allocation6 + $0x14] ss:$8 sps:$4 sm:$0xff]   ;;  %370 = vmatprep.subr.bf16.mxu1 %v732_v4  ;;  %v737_v7 = vld [vmem:[#allocation6 + $0x10] ss:$8 sps:$4 sm:$0xff]  }
  0x4c   :  { %371 = vmatpush1.bf16.msra.mxu1 %v734_v5  ;;  %v738_v8 = vld [vmem:[#allocation6 + $0x24] ss:$8 sps:$4 sm:$0xff]   ;;  %v740_v9 = vld [vmem:[#allocation6 + $0x20] ss:$8 sps:$4 sm:$0xff]   ;;  %v741_v10 = vld [vmem:[#allocation6 + $0x34] ss:$8 sps:$4 sm:$0xff]  }
  0x4d   :  { %372 = vmatprep.subr.bf16.mxu1 %v735_v6  ;;  %v743_v11 = vld [vmem:[#allocation6 + $0x30] ss:$8 sps:$4 sm:$0xff]   ;;  %v744_v12 = vld [vmem:[#allocation6 + $0x44] ss:$8 sps:$4 sm:$0xff]   ;;  %v746_v13 = vld [vmem:[#allocation6 + $0x40] ss:$8 sps:$4 sm:$0xff]  }
  0x4e   :  { %647 = vmatmul.mubr.msk.bf16.vlgmr.msra.gmra.mrb[0].mxu0 %vm113_vm0, %v731_v3  ;;  %v747_v14 = vld [vmem:[#allocation6 + $0x54] ss:$8 sps:$4 sm:$0xff]   ;;  %v749_v15 = vld [vmem:[#allocation6 + $0x50] ss:$8 sps:$4 sm:$0xff]   ;;  %v750_v16 = vld [vmem:[#allocation6 + $0x64] ss:$8 sps:$4 sm:$0xff]  }
  0x4f   :  { %v752_v17 = vld [vmem:[#allocation6 + $0x60] ss:$8 sps:$4 sm:$0xff]   ;;  %v753_v18 = vld [vmem:[#allocation6 + $0x74] ss:$8 sps:$4 sm:$0xff]   ;;  %v755_v19 = vld [vmem:[#allocation6 + $0x70] ss:$8 sps:$4 sm:$0xff]  }
  0x50   :  { %373 = vmatpush1.bf16.msra.mxu1 %v737_v7  ;;  %v756_v20 = vld [vmem:[#allocation6 + $0x84] ss:$8 sps:$4 sm:$0xff]   ;;  %v758_v21 = vld [vmem:[#allocation6 + $0x80] ss:$8 sps:$4 sm:$0xff]   ;;  %v759_v22 = vld [vmem:[#allocation6 + $0x94] ss:$8 sps:$4 sm:$0xff]  }
  0x51   :  { %374 = vmatprep.subr.bf16.mxu1 %v738_v8  ;;  %v761_v23 = vld [vmem:[#allocation6 + $0x90] ss:$8 sps:$4 sm:$0xff]   ;;  %v762_v24 = vld [vmem:[#allocation6 + $0xa4] ss:$8 sps:$4 sm:$0xff]   ;;  %v764_v25 = vld [vmem:[#allocation6 + $0xa0] ss:$8 sps:$4 sm:$0xff]  }
  0x52   :  { %v765_v26 = vld [vmem:[#allocation6 + $0xb4] ss:$8 sps:$4 sm:$0xff]   ;;  %v767_v27 = vld [vmem:[#allocation6 + $0xb0] ss:$8 sps:$4 sm:$0xff]   ;;  %v768_v28 = vld [vmem:[#allocation6 + $0xc4] ss:$8 sps:$4 sm:$0xff]  }
  0x53   :  { %v770_v29 = vld [vmem:[#allocation6 + $0xc0] ss:$8 sps:$4 sm:$0xff]   ;;  %v771_v30 = vld [vmem:[#allocation6 + $0xd4] ss:$8 sps:$4 sm:$0xff]   ;;  %v773_v31 = vld [vmem:[#allocation6 + $0xd0] ss:$8 sps:$4 sm:$0xff]  }
  0x54   :  { %375 = vmatpush1.bf16.msra.mxu1 %v740_v9  ;;  %v774_v32 = vld [vmem:[#allocation6 + $0xe4] ss:$8 sps:$4 sm:$0xff]   ;;  %v776_v33 = vld [vmem:[#allocation6 + $0xe0] ss:$8 sps:$4 sm:$0xff]   ;;  %v777_v34 = vld [vmem:[#allocation6 + $0xf4] ss:$8 sps:$4 sm:$0xff]  }
  0x55   :  { %376 = vmatprep.subr.bf16.mxu1 %v741_v10  ;;  %v779_v35 = vld [vmem:[#allocation6 + $0xf0] ss:$8 sps:$4 sm:$0xff]   ;;  %v780_v36 = vld [vmem:[#allocation7 + $0x40] sm:$0xff]   ;;  %v782_v38 = vld [vmem:[#allocation7 + $0x48] sm:$0xff]   ;;  %v89_v48 = vshrl.u32 %v88_v47, 7 }
  0x56   :  { %v781_v37 = vld [vmem:[#allocation7] sm:$0xff]   ;;  %697 = vmatprep.subr.bf16.mxu0 %v780_v36  ;;  %v783_v39 = vld [vmem:[#allocation7 + $0x8] sm:$0xff]   ;;  %v784_v40 = vld [vmem:[#allocation7 + $0x50] sm:$0xff]  }
  0x57   :  { %698 = vmatpush3.bf16.msra.mxu0 %v781_v37  ;;  %v785_v41 = vld [vmem:[#allocation7 + $0x10] sm:$0xff]   ;;  %v786_v42 = vld [vmem:[#allocation7 + $0x58] sm:$0xff]   ;;  %v788_v44 = vld [vmem:[#allocation7 + $0x60] sm:$0xff]   ;;  %v90_v49 = vsub.s32 0, %v89_v48  ;;  %v94_v51 = vsub.s32 1, %v89_v48 }
  0x58   :  { %377 = vmatpush1.bf16.msra.mxu1 %v743_v11  ;;  %699 = vmatprep.subr.bf16.mxu0 %v782_v38  ;;  %v787_v43 = vld [vmem:[#allocation7 + $0x18] sm:$0xff]   ;;  %v789_v45 = vld [vmem:[#allocation7 + $0x20] sm:$0xff]   ;;  %v790_v46 = vld [vmem:[#allocation7 + $0x68] sm:$0xff]  }
  0x59   :  { %378 = vmatprep.subr.bf16.mxu1 %v744_v12  ;;  %v86_v50 = vld [vmem:[%s1039_s2] sm:$0x3]  ;;  %v792_v5 = vld [vmem:[#allocation7 + $0x70] sm:$0xff]   ;;  %v794_v7 = vld [vmem:[#allocation7 + $0x78] sm:$0xff]  }
  0x5a   :  { %v91_v52 = vrot.slane %v86_v50, %v90_v49  ;;  %v95_v53 = vrot.slane %v86_v50, %v94_v51  ;;  %v791_v4 = vld [vmem:[#allocation7 + $0x28] sm:$0xff]   ;;  %v793_v6 = vld [vmem:[#allocation7 + $0x30] sm:$0xff]   ;;  %v795_v8 = vld [vmem:[#allocation7 + $0x38] sm:$0xff]  }
  0x5b   :  { %700 = vmatpush3.bf16.msra.mxu0 %v783_v39  ;;  %v198_v9 = vld [vmem:[%s1041_s4] sm:$0x3] }
  0x5c   :  { %379 = vmatpush1.bf16.msra.mxu1 %v746_v13  ;;  %701 = vmatprep.subr.bf16.mxu0 %v784_v40  ;;  %v203_v10 = vrot.slane %v198_v9, %v90_v49  ;;  %v207_v11 = vrot.slane %v198_v9, %v94_v51  ;;  %v596_v49 = vand.u32 127, %v88_v47 }
  0x5d   :  { %380 = vmatprep.subr.bf16.mxu1 %v747_v14 }
  0x5e   :  { %vm631_vm1 = vcmp.lt.s32.totalorder %v596_v49, 4 }
  0x5f   :  { %702 = vmatpush3.bf16.msra.mxu0 %v785_v41 }
  0x60   :  { %381 = vmatpush1.bf16.msra.mxu1 %v749_v15  ;;  %703 = vmatprep.subr.bf16.mxu0 %v786_v42 }
  0x61   :  { %382 = vmatprep.subr.bf16.mxu1 %v750_v16 }
  0x63   :  { %704 = vmatpush3.bf16.msra.mxu0 %v787_v43 }
  0x64   :  { %383 = vmatpush1.bf16.msra.mxu1 %v752_v17  ;;  %705 = vmatprep.subr.bf16.mxu0 %v788_v44 }
  0x65   :  { %384 = vmatprep.subr.bf16.mxu1 %v753_v18 }
  0x67   :  { %706 = vmatpush3.bf16.msra.mxu0 %v789_v45 }
  0x68   :  { %385 = vmatpush1.bf16.msra.mxu1 %v755_v19  ;;  %707 = vmatprep.subr.bf16.mxu0 %v790_v46 }
  0x69   :  { %386 = vmatprep.subr.bf16.mxu1 %v756_v20 }
  0x6b   :  { %708 = vmatpush3.bf16.msra.mxu0 %v791_v4 }
  0x6c   :  { %387 = vmatpush1.bf16.msra.mxu1 %v758_v21  ;;  %709 = vmatprep.subr.bf16.mxu0 %v792_v5 }
  0x6d   :  { %388 = vmatprep.subr.bf16.mxu1 %v759_v22 }
  0x6f   :  { %710 = vmatpush3.bf16.msra.mxu0 %v793_v6 }
  0x70   :  { %389 = vmatpush1.bf16.msra.mxu1 %v761_v23  ;;  %711 = vmatprep.subr.bf16.mxu0 %v794_v7 }
  0x71   :  { %390 = vmatprep.subr.bf16.mxu1 %v762_v24 }
  0x73   :  { %712 = vmatpush3.bf16.msra.mxu0 %v795_v8 }
  0x74   :  { %391 = vmatpush1.bf16.msra.mxu1 %v764_v25 }
  0x75   :  { %392 = vmatprep.subr.bf16.mxu1 %v765_v26 }
  0x78   :  { %393 = vmatpush1.bf16.msra.mxu1 %v767_v27  ;;  %v680_v27 = vld [vmem:[%s1043_s6] ss:$0 sm:$0xff] }
  0x79   :  { %394 = vmatprep.subr.bf16.mxu1 %v768_v28 }
  0x7c   :  { %395 = vmatpush1.bf16.msra.mxu1 %v770_v29 }
  0x7d   :  { %396 = vmatprep.subr.bf16.mxu1 %v771_v30 }
  0x80   :  { %397 = vmatpush1.bf16.msra.mxu1 %v773_v31 }
  0x81   :  { %398 = vmatprep.subr.bf16.mxu1 %v774_v32 }
  0x84   :  { %399 = vmatpush1.bf16.msra.mxu1 %v776_v33 }
  0x85   :  { %400 = vmatprep.subr.bf16.mxu1 %v777_v34 }
  0x88   :  { %401 = vmatpush1.bf16.msra.mxu1 %v779_v35 }
 0x121   :  { %v151_v54 = vpop.f32.mrb[0].mxu0 }
 0x122   :  { %v152_v55 = vadd.f32 %v151_v54, %v91_v52  ;;  %v153_v56 = vpop.f32.mrb[1].mxu0 }
 0x123   :  { %v154_v57 = vadd.f32 %v153_v56, %v95_v53  ;;  %v155_v58 = vpop.f32.mrb[2].mxu0 }
 0x124   :  { %v156_v59 = vadd.f32 %v155_v58, %v91_v52  ;;  %v157_v60 = vpop.f32.mrb[3].mxu0  ;;  %v160_v62 = vmax.f32 %v152_v55, 0.0 }
 0x125   :  { %v158_v61 = vadd.f32 %v157_v60, %v95_v53  ;;  %v161_v0 = vmax.f32 %v154_v57, 0.0 }
 0x126   :  { %v162_v63 = vmax.f32 %v156_v59, 0.0 }
 0x127   :  { %v163_v1 = vmax.f32 %v158_v61, 0.0 }
 0x128   :  { %v164_v2 = vpack.c.bf16 %v162_v63, %v160_v62 }
 0x129   :  { %v165_v3 = vpack.c.bf16 %v163_v1, %v161_v0 }
 0x12b   :  { %402 = vmatprep.mubr.bf16.mxu1 %v165_v3 }
 0x12c   :  { %403 = vmatmul.mubr.bf16.vlgmr.msra.gmra.mrb[0].mxu1 %v164_v2 }
 0x1ff   :  { %v404_v12 = vpop.f32.mrb[0].mxu1 }
 0x200   :  { %v405_v13 = vadd.f32 %v404_v12, %v203_v10  ;;  %v406_v14 = vpop.f32.mrb[1].mxu1 }
 0x201   :  { %v407_v15 = vadd.f32 %v406_v14, %v207_v11  ;;  %v408_v16 = vpop.f32.mrb[2].mxu1 }
 0x202   :  { %v409_v17 = vadd.f32 %v408_v16, %v203_v10  ;;  %v410_v18 = vpop.f32.mrb[3].mxu1  ;;  %v413_v20 = vmax.f32 %v405_v13, 0.0 }
 0x203   :  { %v411_v19 = vadd.f32 %v410_v18, %v207_v11  ;;  %v414_v22 = vmax.f32 %v407_v15, 0.0 }
 0x204   :  { %v415_v21 = vmax.f32 %v409_v17, 0.0 }
 0x205   :  { %v416_v23 = vmax.f32 %v411_v19, 0.0 }
 0x206   :  { %v417_v24 = vpack.c.bf16 %v415_v21, %v413_v20 }
 0x207   :  { %v418_v25 = vpack.c.bf16 %v416_v23, %v414_v22 }
 0x209   :  { %586 = vmatprep.mubr.bf16.mxu0 %v418_v25 }
 0x20a   :  { %587 = vmatmul.mubr.bf16.vlgmr.msra.gmra.mrb[4].mxu0 %v417_v24 }
 0x2dd   :  { %v713_v26 = vpop.f32.mrb[4].mxu0 }
 0x2de   :  { %v714_v28 = vpop.f32.mrb[5].mxu0 }
 0x2df   :  { %v715_v29 = vadd.f32 %v714_v28, %v713_v26  ;;  %v716_v30 = vpop.f32.mrb[6].mxu0 }
 0x2e0   :  { %v717_v31 = vpop.f32.mrb[7].mxu0 }
 0x2e1   :  { %v589_v32 = vadd.f32 %v715_v29, %v680_v27  ;;  %v718_v33 = vadd.f32 %v717_v31, %v716_v30 }
 0x2e3   :  { %v603_v34 = vand.u32 2147483647, %v589_v32  ;;  %v592_v35 = vadd.f32 %v718_v33, %v680_v27  ;;  %v601_v58 = vmax.f32 %v589_v32, 0.0 }
 0x2e5   :  { %v605_v36 = vsub.f32 0.0, %v603_v34  ;;  %v604_v37 = vand.u32 2147483647, %v592_v35  ;;  %v602_v1 = vmax.f32 %v592_v35, 0.0 }
 0x2e7   :  { %v607_v38 = vmul.f32 1.442695, %v605_v36  ;;  %v606_v39 = vsub.f32 0.0, %v604_v37 }
 0x2e9   :  { %796 = vpow2.f32 %v607_v38  ;;  %v609_v40 = vmul.f32 1.442695, %v606_v39 }
 0x2eb   :  { %798 = vpow2.f32 %v609_v40 }
 0x2f3   :  { %v797_v41 = vpop.eup %796 }
 0x2f4   :  { %v611_v42 = vadd.f32 1.0, %v797_v41  ;;  %v614_v45 = vmul.f32 -0.5, %v797_v41  ;;  %v617_v50 = vand.u32 2147483647, %v797_v41 }
 0x2f5   :  { %v799_v43 = vpop.eup %798 }
 0x2f6   :  { %800 = vlog2.f32 %v611_v42  ;;  %v620_v44 = vadd.f32 1.0, %v799_v43  ;;  %v623_v46 = vmul.f32 -0.5, %v799_v43  ;;  %v615_v48 = vadd.f32 1.0, %v614_v45 }
 0x2f7   :  { %802 = vtanh.f32 %v589_v32  ;;  %v626_v53 = vand.u32 2147483647, %v799_v43  ;;  %vm618_vm2 = vcmp.lt.f32.partialorder %v617_v50, 0.0004427343 }
 0x2f8   :  { %804 = vlog2.f32 %v620_v44  ;;  %v624_v51 = vadd.f32 1.0, %v623_v46  ;;  %v616_v56 = vmul.f32 %v797_v41, %v615_v48 }
 0x2f9   :  { %806 = vtanh.f32 %v592_v35  ;;  %vm627_vm4 = vcmp.lt.f32.partialorder %v626_v53, 0.0004427343 }
 0x2fa   :  { %v625_v62 = vmul.f32 %v799_v43, %v624_v51 }
 0x300   :  { %v801_v52 = vpop.eup %800 }
 0x301   :  { %v803_v54 = vpop.eup %802  ;;  %v613_v55 = vmul.f32 0.6931472, %v801_v52 }
 0x302   :  { %v805_v57 = vpop.eup %804  ;;  %v599_v63 = vmul.f32 2.0, %v803_v54 }
 0x303   :  { %v807_v59 = vpop.eup %806  ;;  %v619_v60 = vsel %vm618_vm2, %v616_v56, %v613_v55  ;;  %v622_v61 = vmul.f32 0.6931472, %v805_v57 }
 0x304   :  { %v629_v0 = vadd.f32 %v619_v60, %v601_v58  ;;  %v600_v3 = vmul.f32 2.0, %v807_v59 }
 0x305   :  { %v628_v47 = vsel %vm627_vm4, %v625_v62, %v622_v61 }
 0x306   :  { %v632_v2 = vsel %vm631_vm1, %v599_v63, %v629_v0  ;;  %v630_v4 = vadd.f32 %v628_v47, %v602_v1 }
 0x307   :  { %635 = vst.msk [vmem:[%s1044_s7] sm:$0xff] %vm634_vm3, %v632_v2 }
 0x308   :  { %v633_v5 = vsel %vm631_vm1, %v600_v3, %v630_v4 }
 0x309   :  { %636 = vst.msk [vmem:[%s1044_s7 + $0x8] sm:$0xff] %vm634_vm3, %v633_v5 }
 0x30a   :  { %641 = vsyncpa [#allocation3], 1 }
 0x30b   :  { %642 = vsyncpa [#allocation5], 1 }
 0x30c   :  { %643 = vsyncpa [#allocation8], 1 }

</bundles_post_ra>
